<compile_context>
chip_gen: v7x
topology: tpu7x:2x2x1
jax: 0.10.0
libtpu: 0.0.40
codegen_flags: <defaults>
</compile_context>

<pallas_src>
import functools

import jax
import jax.numpy as jnp
from jax.experimental import pallas as pl
from jax.experimental.pallas import tpu as pltpu


def _round_up(x, m):
    return ((x + m - 1) // m) * m


def _cdiv(a, b):
    return (a + b - 1) // b


def _accum(acc_ref, vals):
    """Accumulate a 2-D f32 partial into a vreg-shaped scratch.

    Common path (rows % 8 == 0): grouped sublane add (pure VPU vreg adds, no
    per-step cross-lane XLU collapse).  Fallback (tiny single-tile shapes):
    full reduce added into element (0, 0) only.
    """
    r, l = vals.shape
    if r % 8 == 0:
        acc_ref[...] += jnp.sum(vals.reshape(r // 8, 8, l), axis=0)
    else:
        sel = ((jax.lax.broadcasted_iota(jnp.int32, acc_ref.shape, 0) == 0) &
               (jax.lax.broadcasted_iota(jnp.int32, acc_ref.shape, 1) == 0))
        acc_ref[...] += jnp.where(sel, jnp.sum(vals), 0.0)


def _detection_loss_kernel(cls_pred_ref, cls_tgt_ref, bbox_pred_ref,
                           bbox_tgt_ref, out_ref, acc_ce, acc_bb, *,
                           n_rows, tile_n, tiles_per_split,
                           cls_weight, bbox_weight):
    i = pl.program_id(1)
    t = pl.program_id(0) * tiles_per_split + i       # logical row tile id

    @pl.when(i == 0)
    def _init():
        acc_ce[...] = jnp.zeros_like(acc_ce)
        acc_bb[...] = jnp.zeros_like(acc_bb)

    # ---------------- cross-entropy partial for this row tile ----------------
    logits = cls_pred_ref[...].astype(jnp.float32)     # (tn, C)
    tgt = cls_tgt_ref[...]                             # (tn, 1) int32
    tn, n_cls = logits.shape

    row_max = jnp.max(logits, axis=-1, keepdims=True)
    shifted = logits - row_max
    lse = jnp.log(jnp.sum(jnp.exp(shifted), axis=-1, keepdims=True))   # (tn, 1)

    col_ids = jax.lax.broadcasted_iota(jnp.int32, (1, n_cls), 1)
    tgt_logit = jnp.sum(jnp.where(col_ids == tgt, shifted, 0.0),
                        axis=-1, keepdims=True)                        # (tn, 1)

    # Mask rows past the real N (ragged tail of the last block and any
    # duplicate/clamped tiles).  where (not multiply) so garbage cannot
    # poison the accumulator via NaN * 0.
    row_ids = t * tile_n + jax.lax.broadcasted_iota(jnp.int32, (tn, 1), 0)
    ce_rows = jnp.where(row_ids < n_rows, lse - tgt_logit, 0.0)
    _accum(acc_ce, ce_rows)

    # ---------------- smooth-L1 partial (lane-dense bbox slab) ---------------
    diff = (bbox_pred_ref[...].astype(jnp.float32)
            - bbox_tgt_ref[...].astype(jnp.float32))
    rb, lb = diff.shape
    adiff = jnp.abs(diff)
    sl1 = jnp.where(adiff < 1.0, 0.5 * diff * diff, adiff - 0.5)
    flat_ids = (t * (tile_n * 4)
                + 128 * jax.lax.broadcasted_iota(jnp.int32, (rb, lb), 0)
                + jax.lax.broadcasted_iota(jnp.int32, (rb, lb), 1))
    sl1 = jnp.where(flat_ids < n_rows * 4, sl1, 0.0)
    _accum(acc_bb, sl1)

    # ---------------- finalize (once per split) -------------------------------
    @pl.when(i == pl.num_programs(1) - 1)
    def _fin():
        ce_sum = jnp.sum(acc_ce[...], keepdims=True)     # (1, 1)
        bb_sum = jnp.sum(acc_bb[...], keepdims=True)     # (1, 1)
        out_ref[0] = ((cls_weight / float(n_rows)) * ce_sum
                      + (bbox_weight / (4.0 * float(n_rows))) * bb_sum)


def _num_tensorcores():
    """Best-effort TensorCore count (2 on v7x, 1 on v5e/v6e)."""
    try:
        info = pltpu.get_tpu_info()
        for attr in ("num_cores", "num_tensorcores", "tensorcores_per_chip",
                     "cores_per_chip"):
            v = getattr(info, attr, None)
            if isinstance(v, int) and v > 0:
                return min(2, v)
    except Exception:
        pass
    return 1


def simple_detection_loss(cls_pred, bbox_pred, cls_target, bbox_target,
                          cls_weight=1.0, bbox_weight=1.0,
                          tile_n=None, num_splits=None):
    B, Q, C = cls_pred.shape
    N = B * Q
    itemsize = jnp.dtype(cls_pred.dtype).itemsize

    # ---- row tile: target ~2 MiB of logits per block (HBM roofline) --------
    if tile_n is None:
        tile_n = (2 * 1024 * 1024) // max(1, C * itemsize)
    tile_n = max(256, min(4096, (int(tile_n) // 256) * 256))
    if N <= tile_n:
        tile_n = N            # single block == full array dims (always legal)
        num_tiles = 1
    else:
        num_tiles = _cdiv(N, tile_n)

    # ---- row-partition count (one per TensorCore on v7x) -------------------
    if num_splits is None:
        num_splits = _num_tensorcores()
    num_splits = max(1, min(int(num_splits), num_tiles))
    tiles_per_split = _cdiv(num_tiles, num_splits)
    needs_clamp = num_splits * tiles_per_split != num_tiles
    last_tile = num_tiles - 1

    # ---- layout plumbing (the dominant logits tensor is NOT copied) --------
    logits2d = cls_pred.reshape(N, C)
    tgt2d = cls_target.reshape(N, 1).astype(jnp.int32)
    slab_rows = _cdiv(N * 4, 128)
    pad = slab_rows * 128 - N * 4                       # <= 127 elems, tiny
    bbp = jnp.pad(bbox_pred.reshape(-1), (0, pad)).reshape(slab_rows, 128)
    bbt = jnp.pad(bbox_target.reshape(-1), (0, pad)).reshape(slab_rows, 128)
    bb_rows = slab_rows if num_tiles == 1 else tile_n // 32

    def row_block(c, i):
        t = c * tiles_per_split + i
        if needs_clamp:
            t = jnp.minimum(t, last_tile)               # in-kernel mask zeroes dup tiles
        return (t, 0)

    # ---- VMEM budget (incl. the 128x-inflated (tile_n,1) target block) -----
    def blk_bytes(r, c_, isz):
        return _round_up(max(r, 1), 8) * _round_up(max(c_, 1), 128) * max(isz, 4)

    footprint = (2 * blk_bytes(tile_n, C, itemsize)      # logits, double buffered
                 + 2 * blk_bytes(tile_n, 1, 4)           # int32 targets
                 + 4 * blk_bytes(bb_rows, 128, itemsize) # 2 bbox streams x 2 bufs
                 + 2 * blk_bytes(8, 128, 4) + 4096)      # scratch + output
    vmem_limit = int(min(max(2 * footprint, 16 * 1024 * 1024),
                         48 * 1024 * 1024))

    kernel = functools.partial(
        _detection_loss_kernel,
        n_rows=N, tile_n=tile_n, tiles_per_split=tiles_per_split,
        cls_weight=float(cls_weight), bbox_weight=float(bbox_weight))

    partials = pl.pallas_call(
        kernel,
        out_shape=jax.ShapeDtypeStruct((num_splits, 1, 1), jnp.float32),
        grid=(num_splits, tiles_per_split),
        in_specs=[
            pl.BlockSpec((tile_n, C), row_block),        # logits (no host pad)
            pl.BlockSpec((tile_n, 1), row_block),        # int32 targets
            pl.BlockSpec((bb_rows, 128), row_block),     # bbox pred slab
            pl.BlockSpec((bb_rows, 128), row_block),     # bbox target slab
        ],
        out_specs=pl.BlockSpec((1, 1, 1), lambda c, i: (c, 0, 0)),
        scratch_shapes=[pltpu.VMEM((8, 1), jnp.float32),     # CE accumulator
                        pltpu.VMEM((8, 128), jnp.float32)],  # bbox accumulator
        compiler_params=pltpu.CompilerParams(
            dimension_semantics=("parallel", "arbitrary"),
            vmem_limit_bytes=vmem_limit),
    )(logits2d, tgt2d, bbp, bbt)
    return jnp.sum(partials)


def _reference_loss(cls_pred, bbox_pred, cls_target, bbox_target,
                    cls_weight=1.0, bbox_weight=1.0):
    B, Q, C = cls_pred.shape
    logits = cls_pred.reshape(-1, C).astype(jnp.float32)
    tgt = cls_target.reshape(-1)
    logp = jax.nn.log_softmax(logits, axis=-1)
    c_loss = -jnp.mean(jnp.take_along_axis(logp, tgt[:, None], axis=-1))
    diff = bbox_pred.astype(jnp.float32) - bbox_target.astype(jnp.float32)
    ad = jnp.abs(diff)
    b_loss = jnp.mean(jnp.where(ad < 1.0, 0.5 * diff * diff, ad - 0.5))
    return cls_weight * c_loss + bbox_weight * b_loss


if __name__ == "__main__":
    key = jax.random.PRNGKey(0)
    cases = [
        dict(shape=(2, 8, 32)),                               # tiny, single tile
        dict(shape=(2, 300, 91)),                             # DETR-like, auto tile
        dict(shape=(2, 300, 91), tile_n=256, num_splits=2),   # multi-tile + 2-way split
    ]
    ok = True
    for case in cases:
        B, Q, C = case["shape"]
        k1, k2, k3, k4, key = jax.random.split(key, 5)
        cls_pred = jax.random.normal(k1, (B, Q, C), dtype=jnp.float32)
        bbox_pred = jax.random.normal(k2, (B, Q, 4), dtype=jnp.float32)
        cls_target = jax.random.randint(k3, (B, Q), 0, C, dtype=jnp.int32)
        bbox_target = jax.random.normal(k4, (B, Q, 4), dtype=jnp.float32)

        loss = simple_detection_loss(
            cls_pred, bbox_pred, cls_target, bbox_target,
            cls_weight=1.0, bbox_weight=1.0,
            tile_n=case.get("tile_n"), num_splits=case.get("num_splits"))
        loss = jax.block_until_ready(loss)
        ref = _reference_loss(cls_pred, bbox_pred, cls_target, bbox_target)
        if not jnp.allclose(loss, ref, rtol=1e-5, atol=1e-5):
            ok = False
            print("MISMATCH", case, float(loss), float(ref))

    if ok:
        print("KERNEL_OK")
</pallas_src>

<mosaic_0001>
module attributes {stable_mosaic.version = 11 : i64} {
  func.func @_detection_loss_kernel(%arg0: i32, %arg1: i32, %arg2: memref<16x32xf32, #tpu.memory_space<vmem>>, %arg3: memref<16x1xi32, #tpu.memory_space<vmem>>, %arg4: memref<1x128xf32, #tpu.memory_space<vmem>>, %arg5: memref<1x128xf32, #tpu.memory_space<vmem>>, %arg6: memref<1x1x1xf32, #tpu.memory_space<vmem>>, %arg7: memref<8x1xf32, #tpu.memory_space<vmem>>, %arg8: memref<8x128xf32, #tpu.memory_space<vmem>>) attributes {dimension_semantics = [#tpu.dimension_semantics<parallel>, #tpu.dimension_semantics<arbitrary>], iteration_bounds = array<i64: 1, 1>, scalar_prefetch = 0 : i64, scratch_operands = 2 : i64, tpu.core_type = #tpu.core_type<tc>, window_params = [{transform_indices = @transform_0, window_bounds = array<i64: 16, 32>}, {transform_indices = @transform_1, window_bounds = array<i64: 16, 1>}, {transform_indices = @transform_2, window_bounds = array<i64: 1, 128>}, {transform_indices = @transform_3, window_bounds = array<i64: 1, 128>}, {transform_indices = @transform_4, window_bounds = array<i64: 1, 1, 1>}]} {
    %c1_i32 = arith.constant 1 : i32
    %0 = arith.muli %arg0, %c1_i32 : i32
    %1 = arith.addi %0, %arg1 : i32
    %c0_i32 = arith.constant 0 : i32
    %2 = arith.cmpi eq, %arg1, %c0_i32 : i32
    %3 = arith.extui %2 : i1 to i32
    %c0_i32_0 = arith.constant 0 : i32
    %4 = arith.cmpi ne, %3, %c0_i32_0 : i32
    scf.if %4 {
      %cst_33 = arith.constant 0.000000e+00 : f32
      %81 = vector.broadcast %cst_33 : f32 to vector<8x1xf32>
      %c0_34 = arith.constant 0 : index
      %c0_35 = arith.constant 0 : index
      %82 = vector.load %arg7[%c0_34, %c0_35] : memref<8x1xf32, #tpu.memory_space<vmem>>, vector<8x1xf32>
      tpu.vector_store %arg7[%c0_34, %c0_35], %81 {strides = array<i32>} : memref<8x1xf32, #tpu.memory_space<vmem>>, vector<8x1xf32>,
      %cst_36 = arith.constant 0.000000e+00 : f32
      %83 = vector.broadcast %cst_36 : f32 to vector<8x128xf32>
      %c0_37 = arith.constant 0 : index
      %c0_38 = arith.constant 0 : index
      %84 = vector.load %arg8[%c0_37, %c0_38] : memref<8x128xf32, #tpu.memory_space<vmem>>, vector<8x128xf32>
      tpu.vector_store %arg8[%c0_37, %c0_38], %83 {strides = array<i32>} : memref<8x128xf32, #tpu.memory_space<vmem>>, vector<8x128xf32>,
    } else {
    }
    %c0 = arith.constant 0 : index
    %c0_1 = arith.constant 0 : index
    %5 = vector.load %arg2[%c0, %c0_1] : memref<16x32xf32, #tpu.memory_space<vmem>>, vector<16x32xf32>
    %c0_2 = arith.constant 0 : index
    %c0_3 = arith.constant 0 : index
    %6 = vector.load %arg3[%c0_2, %c0_3] : memref<16x1xi32, #tpu.memory_space<vmem>>, vector<16x1xi32>
    %cst = arith.constant dense<0xFF800000> : vector<16xf32>
    %7 = vector.multi_reduction <maximumf>, %5, %cst [1] : vector<16x32xf32> to vector<16xf32>
    %8 = vector.shape_cast %7 : vector<16xf32> to vector<16x1xf32>
    %9 = vector.broadcast %8 : vector<16x1xf32> to vector<16x32xf32>
    %10 = arith.subf %5, %9 : vector<16x32xf32>
    %11 = math.exp %10 : vector<16x32xf32>
    %cst_4 = arith.constant dense<0.000000e+00> : vector<16xf32>
    %12 = vector.multi_reduction <add>, %11, %cst_4 [1] : vector<16x32xf32> to vector<16xf32>
    %13 = vector.shape_cast %12 : vector<16xf32> to vector<16x1xf32>
    %14 = math.log %13 : vector<16x1xf32>
    %15 = tpu.iota {dimensions = array<i32: 1>} : vector<1x32xi32>
    %16 = vector.broadcast %15 : vector<1x32xi32> to vector<16x32xi32>
    %17 = vector.broadcast %6 : vector<16x1xi32> to vector<16x32xi32>
    %18 = arith.cmpi eq, %16, %17 : vector<16x32xi32>
    %cst_5 = arith.constant 0.000000e+00 : f32
    %19 = vector.broadcast %cst_5 : f32 to vector<16x32xf32>
    %20 = arith.select %18, %10, %19 : vector<16x32xi1>, vector<16x32xf32>
    %cst_6 = arith.constant dense<0.000000e+00> : vector<16xf32>
    %21 = vector.multi_reduction <add>, %20, %cst_6 [1] : vector<16x32xf32> to vector<16xf32>
    %22 = vector.shape_cast %21 : vector<16xf32> to vector<16x1xf32>
    %c16_i32 = arith.constant 16 : i32
    %23 = arith.muli %1, %c16_i32 : i32
    %24 = tpu.iota {dimensions = array<i32: 0>} : vector<16x1xi32>
    %25 = vector.broadcast %23 : i32 to vector<16x1xi32>
    %26 = arith.addi %25, %24 : vector<16x1xi32>
    %c16_i32_7 = arith.constant 16 : i32
    %27 = vector.broadcast %c16_i32_7 : i32 to vector<16x1xi32>
    %28 = arith.cmpi slt, %26, %27 : vector<16x1xi32>
    %29 = arith.subf %14, %22 : vector<16x1xf32>
    %cst_8 = arith.constant 0.000000e+00 : f32
    %30 = vector.broadcast %cst_8 : f32 to vector<16x1xf32>
    %31 = arith.select %28, %29, %30 : vector<16x1xi1>, vector<16x1xf32>
    %c0_9 = arith.constant 0 : index
    %c0_10 = arith.constant 0 : index
    %32 = vector.load %arg7[%c0_9, %c0_10] : memref<8x1xf32, #tpu.memory_space<vmem>>, vector<8x1xf32>
    %33 = vector.shape_cast %31 : vector<16x1xf32> to vector<2x8x1xf32>
    %cst_11 = arith.constant dense<0.000000e+00> : vector<8x1xf32>
    %34 = vector.multi_reduction <add>, %33, %cst_11 [0] : vector<2x8x1xf32> to vector<8x1xf32>
    %35 = arith.addf %32, %34 : vector<8x1xf32>
    %c0_12 = arith.constant 0 : index
    %c0_13 = arith.constant 0 : index
    %36 = vector.load %arg7[%c0_12, %c0_13] : memref<8x1xf32, #tpu.memory_space<vmem>>, vector<8x1xf32>
    tpu.vector_store %arg7[%c0_12, %c0_13], %35 {strides = array<i32>} : memref<8x1xf32, #tpu.memory_space<vmem>>, vector<8x1xf32>,
    %c0_14 = arith.constant 0 : index
    %c0_15 = arith.constant 0 : index
    %37 = vector.load %arg4[%c0_14, %c0_15] : memref<1x128xf32, #tpu.memory_space<vmem>>, vector<1x128xf32>
    %c0_16 = arith.constant 0 : index
    %c0_17 = arith.constant 0 : index
    %38 = vector.load %arg5[%c0_16, %c0_17] : memref<1x128xf32, #tpu.memory_space<vmem>>, vector<1x128xf32>
    %39 = arith.subf %37, %38 : vector<1x128xf32>
    %40 = math.absf %39 : vector<1x128xf32>
    %cst_18 = arith.constant 1.000000e+00 : f32
    %41 = vector.broadcast %cst_18 : f32 to vector<1x128xf32>
    %42 = arith.cmpf olt, %40, %41 : vector<1x128xf32>
    %cst_19 = arith.constant 5.000000e-01 : f32
    %43 = vector.broadcast %cst_19 : f32 to vector<1x128xf32>
    %44 = arith.mulf %43, %39 : vector<1x128xf32>
    %45 = arith.mulf %44, %39 : vector<1x128xf32>
    %cst_20 = arith.constant 5.000000e-01 : f32
    %46 = vector.broadcast %cst_20 : f32 to vector<1x128xf32>
    %47 = arith.subf %40, %46 : vector<1x128xf32>
    %48 = arith.select %42, %45, %47 : vector<1x128xi1>, vector<1x128xf32>
    %c64_i32 = arith.constant 64 : i32
    %49 = arith.muli %1, %c64_i32 : i32
    %50 = tpu.iota {dimensions = array<i32: 0>} : vector<1x128xi32>
    %c128_i32 = arith.constant 128 : i32
    %51 = vector.broadcast %c128_i32 : i32 to vector<1x128xi32>
    %52 = arith.muli %51, %50 : vector<1x128xi32>
    %53 = vector.broadcast %49 : i32 to vector<1x128xi32>
    %54 = arith.addi %53, %52 : vector<1x128xi32>
    %55 = tpu.iota {dimensions = array<i32: 1>} : vector<1x128xi32>
    %56 = arith.addi %54, %55 : vector<1x128xi32>
    %c64_i32_21 = arith.constant 64 : i32
    %57 = vector.broadcast %c64_i32_21 : i32 to vector<1x128xi32>
    %58 = arith.cmpi slt, %56, %57 : vector<1x128xi32>
    %cst_22 = arith.constant 0.000000e+00 : f32
    %59 = vector.broadcast %cst_22 : f32 to vector<1x128xf32>
    %60 = arith.select %58, %48, %59 : vector<1x128xi1>, vector<1x128xf32>
    %61 = tpu.iota {dimensions = array<i32: 0>} : vector<8x128xi32>
    %c0_i32_23 = arith.constant 0 : i32
    %62 = vector.broadcast %c0_i32_23 : i32 to vector<8x128xi32>
    %63 = arith.cmpi eq, %61, %62 : vector<8x128xi32>
    %64 = tpu.iota {dimensions = array<i32: 1>} : vector<8x128xi32>
    %c0_i32_24 = arith.constant 0 : i32
    %65 = vector.broadcast %c0_i32_24 : i32 to vector<8x128xi32>
    %66 = arith.cmpi eq, %64, %65 : vector<8x128xi32>
    %67 = arith.andi %63, %66 : vector<8x128xi1>
    %c0_25 = arith.constant 0 : index
    %c0_26 = arith.constant 0 : index
    %68 = vector.load %arg8[%c0_25, %c0_26] : memref<8x128xf32, #tpu.memory_space<vmem>>, vector<8x128xf32>
    %69 = vector.shape_cast %60 : vector<1x128xf32> to vector<1x1x128xf32>
    %cst_27 = arith.constant dense<0.000000e+00> : vector<1xf32>
    %70 = vector.multi_reduction <add>, %69, %cst_27 [1, 2] : vector<1x1x128xf32> to vector<1xf32>
    %71 = vector.shape_cast %70 : vector<1xf32> to vector<1x1x1xf32>
    %72 = vector.extract %71[0, 0, 0] : f32 from vector<1x1x1xf32>
    %cst_28 = arith.constant 0.000000e+00 : f32
    %73 = vector.broadcast %72 : f32 to vector<8x128xf32>
    %74 = vector.broadcast %cst_28 : f32 to vector<8x128xf32>
    %75 = arith.select %67, %73, %74 : vector<8x128xi1>, vector<8x128xf32>
    %76 = arith.addf %68, %75 : vector<8x128xf32>
    %c0_29 = arith.constant 0 : index
    %c0_30 = arith.constant 0 : index
    %77 = vector.load %arg8[%c0_29, %c0_30] : memref<8x128xf32, #tpu.memory_space<vmem>>, vector<8x128xf32>
    tpu.vector_store %arg8[%c0_29, %c0_30], %76 {strides = array<i32>} : memref<8x128xf32, #tpu.memory_space<vmem>>, vector<8x128xf32>,
    %c0_i32_31 = arith.constant 0 : i32
    %78 = arith.cmpi eq, %arg1, %c0_i32_31 : i32
    %79 = arith.extui %78 : i1 to i32
    %c0_i32_32 = arith.constant 0 : i32
    %80 = arith.cmpi ne, %79, %c0_i32_32 : i32
    scf.if %80 {
      %c0_33 = arith.constant 0 : index
      %c0_34 = arith.constant 0 : index
      %81 = vector.load %arg7[%c0_33, %c0_34] : memref<8x1xf32, #tpu.memory_space<vmem>>, vector<8x1xf32>
      %82 = vector.shape_cast %81 : vector<8x1xf32> to vector<1x8x1xf32>
      %cst_35 = arith.constant dense<0.000000e+00> : vector<1xf32>
      %83 = vector.multi_reduction <add>, %82, %cst_35 [1, 2] : vector<1x8x1xf32> to vector<1xf32>
      %84 = vector.shape_cast %83 : vector<1xf32> to vector<1x1x1xf32>
      %85 = vector.extract %84[0, 0, 0] : f32 from vector<1x1x1xf32>
      %86 = vector.broadcast %85 : f32 to vector<1x1xf32>
      %c0_36 = arith.constant 0 : index
      %c0_37 = arith.constant 0 : index
      %87 = vector.load %arg8[%c0_36, %c0_37] : memref<8x128xf32, #tpu.memory_space<vmem>>, vector<8x128xf32>
      %88 = vector.shape_cast %87 : vector<8x128xf32> to vector<1x8x128xf32>
      %cst_38 = arith.constant dense<0.000000e+00> : vector<1xf32>
      %89 = vector.multi_reduction <add>, %88, %cst_38 [1, 2] : vector<1x8x128xf32> to vector<1xf32>
      %90 = vector.shape_cast %89 : vector<1xf32> to vector<1x1x1xf32>
      %91 = vector.extract %90[0, 0, 0] : f32 from vector<1x1x1xf32>
      %92 = vector.broadcast %91 : f32 to vector<1x1xf32>
      %cst_39 = arith.constant 6.250000e-02 : f32
      %93 = vector.broadcast %cst_39 : f32 to vector<1x1xf32>
      %94 = arith.mulf %93, %86 : vector<1x1xf32>
      %cst_40 = arith.constant 1.562500e-02 : f32
      %95 = vector.broadcast %cst_40 : f32 to vector<1x1xf32>
      %96 = arith.mulf %95, %92 : vector<1x1xf32>
      %97 = arith.addf %94, %96 : vector<1x1xf32>
      %c0_41 = arith.constant 0 : index
      %c0_42 = arith.constant 0 : index
      %c0_43 = arith.constant 0 : index
      %98 = vector.load %arg6[%c0_41, %c0_42, %c0_43] : memref<1x1x1xf32, #tpu.memory_space<vmem>>, vector<1x1x1xf32>
      %99 = vector.shape_cast %98 : vector<1x1x1xf32> to vector<1x1xf32>
      %100 = vector.shape_cast %97 : vector<1x1xf32> to vector<1x1x1xf32>
      tpu.vector_store %arg6[%c0_41, %c0_42, %c0_43], %100 {strides = array<i32>} : memref<1x1x1xf32, #tpu.memory_space<vmem>>, vector<1x1x1xf32>,
    } else {
    }
    return
  }
  func.func @transform_0(%arg0: i32, %arg1: i32) -> (i32, i32) {
    %c1_i32 = arith.constant 1 : i32
    %0 = arith.muli %arg0, %c1_i32 : i32
    %1 = arith.addi %0, %arg1 : i32
    %c0_i32 = arith.constant 0 : i32
    %c0_i32_0 = arith.constant 0 : i32
    return %1, %c0_i32 : i32, i32
  }
  func.func @transform_1(%arg0: i32, %arg1: i32) -> (i32, i32) {
    %c1_i32 = arith.constant 1 : i32
    %0 = arith.muli %arg0, %c1_i32 : i32
    %1 = arith.addi %0, %arg1 : i32
    %c0_i32 = arith.constant 0 : i32
    %c0_i32_0 = arith.constant 0 : i32
    return %1, %c0_i32 : i32, i32
  }
  func.func @transform_2(%arg0: i32, %arg1: i32) -> (i32, i32) {
    %c1_i32 = arith.constant 1 : i32
    %0 = arith.muli %arg0, %c1_i32 : i32
    %1 = arith.addi %0, %arg1 : i32
    %c0_i32 = arith.constant 0 : i32
    %c0_i32_0 = arith.constant 0 : i32
    return %1, %c0_i32 : i32, i32
  }
  func.func @transform_3(%arg0: i32, %arg1: i32) -> (i32, i32) {
    %c1_i32 = arith.constant 1 : i32
    %0 = arith.muli %arg0, %c1_i32 : i32
    %1 = arith.addi %0, %arg1 : i32
    %c0_i32 = arith.constant 0 : i32
    %c0_i32_0 = arith.constant 0 : i32
    return %1, %c0_i32 : i32, i32
  }
  func.func @transform_4(%arg0: i32, %arg1: i32) -> (i32, i32, i32) {
    %c0_i32 = arith.constant 0 : i32
    %c0_i32_0 = arith.constant 0 : i32
    %c0_i32_1 = arith.constant 0 : i32
    return %arg0, %c0_i32, %c0_i32_0 : i32, i32, i32
  }
}

</mosaic_0001>

<bundles_post_ra>
// kernel: tpu_custom_call.1
= control target key start
LH: loop header
LB: loop body
LE: loop exit
PB: predicated region body
PF: predicated region fallthrough
CT: control target
= control target key end

     0   :  { %vm102_vm0 = vcmask 261120   ;;  %v125_v3 = vlaneseq  ;;  %v303_v5 = vmov 0   ;;  %s380_s0 = inlined_call_operand.vmem [shape: f32[16,32], index: 0, kind: input, shape index: {}]   ;;  %s381_s1 = inlined_call_operand.vmem [shape: s32[16,1], index: 1, kind: input, shape index: {}]   ;;  %s382_s2 = inlined_call_operand.vmem [shape: f32[1,128], index: 2, kind: input, shape index: {}]   ;;  %s383_s3 = inlined_call_operand.vmem [shape: f32[1,128], index: 3, kind: input, shape index: {}]   ;;  %s384_s4 = inlined_call_operand.hbm [shape: f32[1,1,1], index: 4, kind: output, shape index: {}]  }
   0x1   :  { %v98_v0 = vld [vmem:[%s380_s0] sm:$0xff]  ;;  %v99_v1 = vld [vmem:[%s380_s0 + $0x8] sm:$0xff]  ;;  %269 = vset.pattern.permute.xlu1 %v303_v5  ;;  %270 = vset.pattern.permute.xlu0 %v303_v5 }
   0x2   :  { %v100_v2 = vld [vmem:[%s381_s1] sm:$0xff]  ;;  %v103_v4 = vsel %vm102_vm0, %v98_v0, -inf  ;;  %v344_v7 = vand.u32 127, %v125_v3  ;;  %v346_v8 = vshrl.u32 %v125_v3, 7 }
   0x3   :  { %v161_v6 = vld [vmem:[%s382_s2] sm:$0x1]  ;;  %104 = vmax.xlane.f32.xlu0 %v103_v4  ;;  %128 = vperm.xlu1 %269, %v100_v2  }
   0x4   :  { %v162_v9 = vld [vmem:[%s383_s3] sm:$0x1] }
   0x5   :  { %9 = vsyncpa [#allocation5], 0  ;;  %v106_v10 = vsel %vm102_vm0, %v99_v1, -inf  ;;  %v101_v11 = vld [vmem:[%s381_s1 + $0x8] sm:$0xff]  ;;  %v163_v12 = vsub.f32 %v161_v6, %v162_v9  ;;  %v171_v13 = vmul.u32 128, %v346_v8  ;;  %vm181_vm3 = vcmask 1040384  }
   0x6   :  { %vm95_vm6 = vcmask 7168   ;;  %v304_v45 = vmov 0.0   ;;  %vm177_vm7 = vcmp.eq.s32.totalorder %v346_v8, 0  ;;  %vm178_vm8 = vcmp.eq.s32.totalorder %v344_v7, 0  ;;  %s305_s26 = smov [#allocation4]  }
   0x7   :  { %v164_v14 = vand.u32 2147483647, %v163_v12  ;;  %v166_v15 = vmul.f32 0.5, %v163_v12  ;;  %107 = vmax.xlane.f32.xlu0 %v106_v10  ;;  %131 = vperm.xlu1 %269, %v101_v11   ;;  %v174_v16 = vadd.s32 %v171_v13, %v344_v7  ;;  %96 = vst.msk [vmem:[#allocation2] sm:$0xff] %vm95_vm6, %v304_v45  ;;  %vm179_vm9 = vmand %vm177_vm7, %vm178_vm8  ;;  %s233_s27 = sshll.u32 %s305_s26, 4  ;;  %vm225_vm10 = vcmask 0   ;;  %s234_s27 = int_to_ptr.vmem [resolvable:$true] %s233_s27 }
   0x8   :  { %s279_s28 = scalar_lea.vmem %s234_s27, 16  ;;  %s283_s29 = scalar_lea.vmem %s234_s27, 32 }
   0x9   :  { %vm165_vm1 = vcmp.lt.f32.partialorder %v164_v14, 1.0  ;;  %v167_v17 = vmul.f32 %v166_v15, %v163_v12  ;;  %v259_v18 = vadd.f32 -0.5, %v164_v14  ;;  %vm175_vm2 = vcmp.lt.s32.totalorder %v174_v16, 64  ;;  %p280_p0 = scmp.ne.s32.totalorder %s234_s27, %s279_s28  ;;  %p284_p1 = scmp.lt.s32.totalorder %s234_s27, %s234_s27 }
   0xa   :  { %p285_p2 = scmp.lt.s32.totalorder %s283_s29, %s279_s28 }
   0xb   :  { %v169_v19 = vsel %vm165_vm1, %v167_v17, %v259_v18 }
   0xc   :  { %v176_v20 = vsel %vm175_vm2, %v169_v19, 0.0  ;;  %p286_p3 = por %p285_p2, %p284_p1 }
   0xd   :  { %v182_v21 = vsel %vm181_vm3, %v176_v20, 0.0 }
   0xe   :  { %183 = vadd.xlane.f32.xlu0 %v182_v21  ;;  %v156_v56 = vld [vmem:[#allocation2] sm:$0xff]  ;;  %p287_p4 = pnand %p286_p3, %p280_p0 }
  0x82   :  { %v129_v30 = vpop.permute.xlu1 %128 }
  0x83   :  { %vm133_vm4 = vcmp.eq.s32.totalorder %v344_v7, %v129_v30 }
  0x86   :  { %v132_v37 = vpop.permute.xlu1 %131 }
  0x87   :  { %vm134_vm5 = vcmp.eq.s32.totalorder %v344_v7, %v132_v37 }
  0x90   :  { %v105_v22 = vpop.xlane.xlu0 %104 }
  0x91   :  { %v109_v23 = vsub.f32 %v98_v0, %v105_v22 }
  0x93   :  { %v111_v24 = vmul.f32 1.442695, %v109_v23  ;;  %v135_v40 = vsel %vm133_vm4, %v109_v23, 0.0 }
  0x94   :  { %v108_v25 = vpop.xlane.xlu0 %107  ;;  %v137_v42 = vsel %vm102_vm0, %v135_v40, 0.0 }
  0x95   :  { %271 = vpow2.f32 %v111_v24  ;;  %v110_v26 = vsub.f32 %v99_v1, %v108_v25 }
  0x97   :  { %v113_v27 = vmul.f32 1.442695, %v110_v26  ;;  %v136_v43 = vsel %vm134_vm5, %v110_v26, 0.0 }
  0x98   :  { %v140_v44 = vsel %vm102_vm0, %v136_v43, 0.0 }
  0x99   :  { %273 = vpow2.f32 %v113_v27 }
  0x9b   :  { %v184_v28 = vpop.xlane.xlu0 %183 }
  0x9c   :  { %v185_v29 = vrot.slane %v184_v28, 4 }
  0x9e   :  { %v186_v31 = vadd.f32 %v185_v29, %v184_v28 }
  0x9f   :  { %v272_v32 = vpop.eup %271 }
  0xa0   :  { %v187_v33 = vrot.slane %v186_v31, 2  ;;  %v115_v34 = vsel %vm102_vm0, %v272_v32, 0.0 }
  0xa1   :  { %116 = vadd.xlane.f32.xlu1 %v115_v34 }
  0xa2   :  { %v188_v35 = vadd.f32 %v187_v33, %v186_v31 }
  0xa3   :  { %v274_v36 = vpop.eup %273 }
  0xa4   :  { %v189_v38 = vrot.slane %v188_v35, 1  ;;  %v118_v39 = vsel %vm102_vm0, %v274_v36, 0.0 }
  0xa5   :  { %119 = vadd.xlane.f32.xlu0 %v118_v39 }
  0xa6   :  { %v190_v41 = vadd.f32 %v189_v38, %v188_v35 }
  0xa8   :  { %260 = vpush %v190_v41 }
  0xa9   :  { %138 = vadd.xlane.f32.xlu0 %v137_v42 }
  0xad   :  { %141 = vadd.xlane.f32.xlu0 %v140_v44 }
  0xd9   :  { %s261_s1 = spop %260 }
  0xda   :  { %v192_v61 = vstv %s261_s1 }
  0xdb   :  { %v193_v62 = vsel %vm179_vm9, %v192_v61, 0.0 }
 0x12e   :  { %v117_v46 = vpop.xlane.xlu1 %116 }
 0x12f   :  { %275 = vlog2.f32 %v117_v46 }
 0x132   :  { %v120_v47 = vpop.xlane.xlu0 %119 }
 0x133   :  { %277 = vlog2.f32 %v120_v47 }
 0x136   :  { %v139_v49 = vpop.xlane.xlu0 %138 }
 0x139   :  { %v276_v48 = vpop.eup %275 }
 0x13a   :  { %v122_v50 = vmul.f32 0.6931472, %v276_v48  ;;  %v142_v53 = vpop.xlane.xlu0 %141 }
 0x13c   :  { %v152_v54 = vsub.f32 %v122_v50, %v139_v49 }
 0x13d   :  { %v278_v51 = vpop.eup %277 }
 0x13e   :  { %v124_v52 = vmul.f32 0.6931472, %v278_v51 }
 0x140   :  { %v153_v55 = vsub.f32 %v124_v52, %v142_v53 }
 0x142   :  { %v157_v57 = vadd.f32 %v153_v55, %v152_v54 }
 0x144   :  { %v158_v58 = vadd.f32 %v157_v57, %v156_v56 }
 0x146   :  { %160 = vst.msk [vmem:[#allocation2] sm:$0xff] %vm95_vm6, %v158_v58 }
 0x14d   :  { %v199_v59 = vld [vmem:[#allocation2] sm:$0xff] }
 0x14e   :  { %v200_v60 = vsel %vm95_vm6, %v199_v59, 0.0 }
 0x14f   :  { %201 = vadd.xlane.f32.xlu0 %v200_v60 }
 0x153   :  { %212 = vadd.xlane.f32.xlu0 %v193_v62 }
 0x1dc   :  { %v202_v63 = vpop.xlane.xlu0 %201 }
 0x1dd   :  { %v203_v0 = vrot.slane %v202_v63, 4 }
 0x1df   :  { %v204_v1 = vadd.f32 %v203_v0, %v202_v63 }
 0x1e0   :  { %v213_v2 = vpop.xlane.xlu0 %212 }
 0x1e1   :  { %v205_v3 = vrot.slane %v204_v1, 2  ;;  %v214_v4 = vrot.slane %v213_v2, 4 }
 0x1e3   :  { %v215_v5 = vadd.f32 %v214_v4, %v213_v2  ;;  %v206_v6 = vadd.f32 %v205_v3, %v204_v1 }
 0x1e5   :  { %v216_v9 = vrot.slane %v215_v5, 2  ;;  %v207_v8 = vrot.slane %v206_v6, 1 }
 0x1e7   :  { %v217_v10 = vadd.f32 %v216_v9, %v215_v5  ;;  %v208_v7 = vadd.f32 %v207_v8, %v206_v6 }
 0x1e9   :  { %262 = vpush %v208_v7  ;;  %v218_v11 = vrot.slane %v217_v10, 1 }
 0x1eb   :  { %v219_v12 = vadd.f32 %v218_v11, %v217_v10 }
 0x1ed   :  { %264 = vpush %v219_v12 }
 0x21a   :  { %s263_s2 = spop %262 }
 0x21b   :  { %v210_v13 = vstv %s263_s2 }
 0x21c   :  { %v222_v15 = vmul.f32 0.0625, %v210_v13 }
 0x21e   :  { %s265_s3 = spop %264 }
 0x21f   :  { %v221_v14 = vstv %s265_s3 }
 0x220   :  { %v223_v16 = vmul.f32 0.015625, %v221_v14 }
 0x222   :  { %v224_v17 = vadd.f32 %v223_v16, %v222_v15 }
 0x224   :  { %226 = vst.msk [vmem:[#allocation4] sm:$0x1] %vm225_vm10, %v224_v17 }
 0x225   :  { %290 = shalt.err (!%p287_p4)
}
 0x226   :  { %s291_s6 = scalar_lea.hbm %s384_s4, 16 }
 0x227   :  { %p292_p5 = scmp.ne.s32.totalorder %s384_s4, %s291_s6  ;;  %p295_p6 = scmp.lt.u32.totalorder %s291_s6, %s384_s4 }
 0x229   :  { %p297_p7 = pnand %p295_p6, %p292_p5 }
 0x22b   :  { %300 = shalt.err (!%p297_p7)
}
 0x22c   :  { %236 = dma.vmem_to_hbm [thread:$0]  %s234_s27, 16, %s384_s4, [#allocation5]  }
 0x22d   :  { %301 = dma.done.wait [#allocation5], 16  }
 0x22e   :  { %302 = vsyncadd [#allocation5], 4294967280 }
 0x22f   :  { %240 = vsyncpa [#allocation5], 1 }

</bundles_post_ra>
